<compile_context>
chip_gen: v5e
topology: v5e:2x2
jax: 0.10.0
libtpu: 0.0.40
codegen_flags: <defaults>
</compile_context>

<pallas_src>
import functools
import math

import jax
import jax.numpy as jnp
import numpy as np
from jax.experimental import pallas as pl
from jax.experimental.pallas import tpu as pltpu


def _bf16_softmax_ok():
    """bf16 VPU/EUP exist on v6e / v7x; v4 / v5e gain nothing from bf16 exp."""
    try:
        kind = jax.devices()[0].device_kind.lower()
    except Exception:
        return False
    return any(tag in kind for tag in ("v6", "v7", "7x"))


def _choose_tile(dim, block, quantum):
    """Largest t <= block with dim % t == 0 and t % quantum == 0, else dim."""
    if dim <= block:
        return dim
    t = (block // quantum) * quantum
    while t >= quantum:
        if dim % t == 0:
            return t
        t -= quantum
    # TODO(synk): pad + mask instead of whole-dim fallback for large,
    # non-divisible sequence lengths (VMEM grows with the full dim here).
    return dim


def _flash_attention_kernel(q_ref, k_ref, v_ref, o_ref,
                            m_ref, l_ref, acc_ref, *, scale, softmax_dtype):
    # q_ref:   (G, TL, E)    k_ref: (G, E, TS)    v_ref: (G, TS, D)
    # o_ref:   (1, TL, G*D)  lane-dense output slab
    # m_ref:   (G, TL, 1) f32  running max of scaled scores
    # l_ref:   (G, TL, 1) f32  running softmax denominator (unnormalized)
    # acc_ref: (G, TL, D) f32  running unnormalized P @ V
    s_idx = pl.program_id(2)

    @pl.when(s_idx == 0)
    def _init():
        m_ref[...] = jnp.full_like(m_ref, -jnp.inf)
        l_ref[...] = jnp.zeros_like(l_ref)
        acc_ref[...] = jnp.zeros_like(acc_ref)

    q = q_ref[...]                                   # native dtype (bf16 ok)
    k = k_ref[...]
    v = v_ref[...]

    # Fold the softmax scale into Q: G*TL*E mults instead of G*TL*TS.
    q = q * jnp.asarray(scale, dtype=q.dtype)

    # scores = Q K^T; K is already (E, TS) so this is the natural matmul
    # shape (no K relayout).  f32 accumulation on the MXU.
    s = jnp.einsum("gle,ges->gls", q, k,
                   preferred_element_type=jnp.float32)        # (G, TL, TS)

    # Online softmax update.
    m_prev = m_ref[...]                                       # (G, TL, 1)
    m_new = jnp.maximum(m_prev, jnp.max(s, axis=-1, keepdims=True))
    alpha = jnp.exp(m_prev - m_new)                           # rescale old

    # exp in bf16 on v6e/v7x (bf16 EUP/VPU), f32 on v5e; denom accumulated f32.
    p = jnp.exp(s.astype(softmax_dtype) - m_new.astype(softmax_dtype))

    l_ref[...] = alpha * l_ref[...] + jnp.sum(
        p, axis=-1, keepdims=True, dtype=jnp.float32)
    acc_ref[...] = alpha * acc_ref[...] + jnp.einsum(
        "gls,gsd->gld", p.astype(v.dtype), v,
        preferred_element_type=jnp.float32)
    m_ref[...] = m_new

    @pl.when(s_idx == pl.num_programs(2) - 1)
    def _finalize():
        g = acc_ref.shape[0]
        l = l_ref[...]
        # EUP reciprocal + one Newton step -> ~f32-accurate 1/l, still cheap.
        inv_l = pl.reciprocal(l, approx=True)
        inv_l = inv_l * (2.0 - l * inv_l)
        normalized = (acc_ref[...] * inv_l).astype(o_ref.dtype)  # (G, TL, D)
        # Lane concat of the G heads -> one dense (TL, G*D) store.
        slab = jnp.concatenate([normalized[j] for j in range(g)], axis=-1)
        o_ref[...] = slab[None]                                   # (1, TL, G*D)


def full_attention(queries, keys, values, scale=None, *,
                   block_g=8, block_l=128, block_s=512,
                   softmax_dtype=None, vmem_limit_bytes=None):
    """Pallas equivalent of FullAttention.forward (dropout = identity).

    queries: (B, L, H, E), keys: (B, S, H, E), values: (B, S, H, D)
    returns: (B, L, H, D)
    """
    B, L, H, E = queries.shape
    _, S, _, D = values.shape
    assert keys.shape == (B, S, H, E)
    assert values.shape[:3] == (B, S, H)
    scale = float(scale) if scale is not None else 1.0 / math.sqrt(E)

    if softmax_dtype is None:
        softmax_dtype = jnp.bfloat16 if _bf16_softmax_ok() else jnp.float32

    BH = B * H
    g = math.gcd(BH, block_g)                  # heads per grid step
    tl = _choose_tile(L, block_l, 8)           # L tile (sublane quantum 8)
    ts = _choose_tile(S, block_s, 128)         # S tile (lane quantum 128)

    # v7x has 2 TensorCores: keep >= 2 steps on the "parallel" grid axes so
    # both cores get work (shrink the head group if B*H and L are tiny).
    while g > 1 and (BH // g) * (L // tl) < 2:
        ng = g // 2
        while ng > 1 and BH % ng:
            ng -= 1
        g = max(ng, 1)

    # Head-major operand layouts, materialized once in HBM so every block DMA
    # reads contiguous, lane-dense rows.  K is pre-transposed to (E, S).
    qt = jnp.transpose(queries, (0, 2, 1, 3)).reshape(BH, L, E)
    kt = jnp.transpose(keys, (0, 2, 3, 1)).reshape(BH, E, S)
    vt = jnp.transpose(values, (0, 2, 1, 3)).reshape(BH, S, D)

    grid = (BH // g, L // tl, S // ts)

    grid_spec = pltpu.PrefetchScalarGridSpec(
        num_scalar_prefetch=0,
        grid=grid,
        in_specs=[
            pl.BlockSpec((g, tl, E), lambda b, lq, sk: (b, lq, 0)),
            pl.BlockSpec((g, E, ts), lambda b, lq, sk: (b, 0, sk)),
            pl.BlockSpec((g, ts, D), lambda b, lq, sk: (b, sk, 0)),
        ],
        out_specs=pl.BlockSpec((1, tl, g * D), lambda b, lq, sk: (b, lq, 0)),
        scratch_shapes=[
            pltpu.VMEM((g, tl, 1), jnp.float32),   # running max m
            pltpu.VMEM((g, tl, 1), jnp.float32),   # running denom l
            pltpu.VMEM((g, tl, D), jnp.float32),   # unnormalized P @ V
        ],
    )

    out = pl.pallas_call(
        functools.partial(_flash_attention_kernel, scale=scale,
                          softmax_dtype=softmax_dtype),
        out_shape=jax.ShapeDtypeStruct((BH // g, L, g * D), queries.dtype),
        grid_spec=grid_spec,
        compiler_params=pltpu.CompilerParams(
            dimension_semantics=("parallel", "parallel", "arbitrary"),
            vmem_limit_bytes=vmem_limit_bytes),
    )(qt, kt, vt)

    # (BH/g, L, g*D) -> (B, L, H, D)
    out = out.reshape(BH // g, L, g, D)
    out = jnp.transpose(out, (0, 2, 1, 3)).reshape(B, H, L, D)
    return jnp.transpose(out, (0, 2, 1, 3))


def _reference(queries, keys, values, scale=None):
    E = queries.shape[-1]
    scale = scale if scale is not None else 1.0 / math.sqrt(E)
    scores = jnp.einsum("blhe,bshe->bhls", queries, keys)
    A = jax.nn.softmax(scale * scores, axis=-1)
    return jnp.einsum("bhls,bshd->blhd", A, values)


if __name__ == "__main__":
    key = jax.random.PRNGKey(0)
    k1, k2, k3, k4, k5, k6 = jax.random.split(key, 6)

    # Tolerance covers the bf16 softmax path on v6e/v7x (exp argument rounded
    # to bf16); with f32 softmax (v5e) the error is ~1e-6.
    TOL = dict(rtol=2e-2, atol=2e-2)

    # Case 1: tiny shapes consistent with the module (single S step,
    # lane-dense 128-wide output slab, grouped heads across batch).
    B, L, S, H, E, D = 2, 8, 8, 4, 32, 32
    q = jax.random.normal(k1, (B, L, H, E), dtype=jnp.float32)
    k = jax.random.normal(k2, (B, S, H, E), dtype=jnp.float32)
    v = jax.random.normal(k3, (B, S, H, D), dtype=jnp.float32)
    out = jax.block_until_ready(full_attention(q, k, v))
    np.testing.assert_allclose(np.asarray(out),
                               np.asarray(_reference(q, k, v)), **TOL)

    # Case 2: multi-tile flash accumulation path (2 L tiles x 2 S steps).
    B2, L2, S2, H2, E2, D2 = 1, 256, 256, 2, 32, 32
    q2 = jax.random.normal(k4, (B2, L2, H2, E2), dtype=jnp.float32)
    k2_ = jax.random.normal(k5, (B2, S2, H2, E2), dtype=jnp.float32)
    v2 = jax.random.normal(k6, (B2, S2, H2, D2), dtype=jnp.float32)
    out2 = jax.block_until_ready(
        full_attention(q2, k2_, v2, block_l=128, block_s=128))
    np.testing.assert_allclose(np.asarray(out2),
                               np.asarray(_reference(q2, k2_, v2)), **TOL)

    print("KERNEL_OK")
</pallas_src>

<mosaic_0001>
module attributes {stable_mosaic.version = 11 : i64} {
  func.func @_flash_attention_kernel(%arg0: i32, %arg1: i32, %arg2: i32, %arg3: memref<4x8x32xf32, #tpu.memory_space<vmem>>, %arg4: memref<4x32x8xf32, #tpu.memory_space<vmem>>, %arg5: memref<4x8x32xf32, #tpu.memory_space<vmem>>, %arg6: memref<1x8x128xf32, #tpu.memory_space<vmem>>, %arg7: memref<4x8x1xf32, #tpu.memory_space<vmem>>, %arg8: memref<4x8x1xf32, #tpu.memory_space<vmem>>, %arg9: memref<4x8x32xf32, #tpu.memory_space<vmem>>) attributes {dimension_semantics = [#tpu.dimension_semantics<parallel>, #tpu.dimension_semantics<parallel>, #tpu.dimension_semantics<arbitrary>], iteration_bounds = array<i64: 2, 1, 1>, scalar_prefetch = 0 : i64, scratch_operands = 3 : i64, tpu.core_type = #tpu.core_type<tc>, window_params = [{transform_indices = @transform_0, window_bounds = array<i64: 4, 8, 32>}, {transform_indices = @transform_1, window_bounds = array<i64: 4, 32, 8>}, {transform_indices = @transform_2, window_bounds = array<i64: 4, 8, 32>}, {transform_indices = @transform_3, window_bounds = array<i64: 1, 8, 128>}]} {
    %c0_i32 = arith.constant 0 : i32
    %0 = arith.cmpi eq, %arg2, %c0_i32 : i32
    %1 = arith.extui %0 : i1 to i32
    %c0_i32_0 = arith.constant 0 : i32
    %2 = arith.cmpi ne, %1, %c0_i32_0 : i32
    scf.if %2 {
      %cst_33 = arith.constant 0xFF800000 : f32
      %34 = vector.broadcast %cst_33 : f32 to vector<4x8x1xf32>
      %c0_34 = arith.constant 0 : index
      %c0_35 = arith.constant 0 : index
      %c0_36 = arith.constant 0 : index
      %35 = vector.load %arg7[%c0_34, %c0_35, %c0_36] : memref<4x8x1xf32, #tpu.memory_space<vmem>>, vector<4x8x1xf32>
      tpu.vector_store %arg7[%c0_34, %c0_35, %c0_36], %34 {strides = array<i32>} : memref<4x8x1xf32, #tpu.memory_space<vmem>>, vector<4x8x1xf32>,
      %cst_37 = arith.constant 0.000000e+00 : f32
      %36 = vector.broadcast %cst_37 : f32 to vector<4x8x1xf32>
      %c0_38 = arith.constant 0 : index
      %c0_39 = arith.constant 0 : index
      %c0_40 = arith.constant 0 : index
      %37 = vector.load %arg8[%c0_38, %c0_39, %c0_40] : memref<4x8x1xf32, #tpu.memory_space<vmem>>, vector<4x8x1xf32>
      tpu.vector_store %arg8[%c0_38, %c0_39, %c0_40], %36 {strides = array<i32>} : memref<4x8x1xf32, #tpu.memory_space<vmem>>, vector<4x8x1xf32>,
      %cst_41 = arith.constant 0.000000e+00 : f32
      %38 = vector.broadcast %cst_41 : f32 to vector<4x8x32xf32>
      %c0_42 = arith.constant 0 : index
      %c0_43 = arith.constant 0 : index
      %c0_44 = arith.constant 0 : index
      %39 = vector.load %arg9[%c0_42, %c0_43, %c0_44] : memref<4x8x32xf32, #tpu.memory_space<vmem>>, vector<4x8x32xf32>
      tpu.vector_store %arg9[%c0_42, %c0_43, %c0_44], %38 {strides = array<i32>} : memref<4x8x32xf32, #tpu.memory_space<vmem>>, vector<4x8x32xf32>,
    } else {
    }
    %c0 = arith.constant 0 : index
    %c0_1 = arith.constant 0 : index
    %c0_2 = arith.constant 0 : index
    %3 = vector.load %arg3[%c0, %c0_1, %c0_2] : memref<4x8x32xf32, #tpu.memory_space<vmem>>, vector<4x8x32xf32>
    %c0_3 = arith.constant 0 : index
    %c0_4 = arith.constant 0 : index
    %c0_5 = arith.constant 0 : index
    %4 = vector.load %arg4[%c0_3, %c0_4, %c0_5] : memref<4x32x8xf32, #tpu.memory_space<vmem>>, vector<4x32x8xf32>
    %c0_6 = arith.constant 0 : index
    %c0_7 = arith.constant 0 : index
    %c0_8 = arith.constant 0 : index
    %5 = vector.load %arg5[%c0_6, %c0_7, %c0_8] : memref<4x8x32xf32, #tpu.memory_space<vmem>>, vector<4x8x32xf32>
    %cst = arith.constant 0.176776692 : f32
    %6 = vector.broadcast %cst : f32 to vector<4x8x32xf32>
    %7 = arith.mulf %3, %6 : vector<4x8x32xf32>
    "tpu.trace_start"() <{level = 10 : i32, message = "gle,ges->gls"}> : () -> ()
    %cst_9 = arith.constant dense<0.000000e+00> : vector<4x8x8xf32>
    %8 = tpu.matmul %7, %4, %cst_9 {dimension_numbers = #tpu.dot_dimension_numbers<[2], [1], [1], [2], [0, 0, 0, 1, 1, 2], [0], [0]>} : vector<4x8x32xf32>, vector<4x32x8xf32>, vector<4x8x8xf32> -> vector<4x8x8xf32>
    "tpu.trace_stop"() : () -> ()
    %c0_10 = arith.constant 0 : index
    %c0_11 = arith.constant 0 : index
    %c0_12 = arith.constant 0 : index
    %9 = vector.load %arg7[%c0_10, %c0_11, %c0_12] : memref<4x8x1xf32, #tpu.memory_space<vmem>>, vector<4x8x1xf32>
    %cst_13 = arith.constant dense<0xFF800000> : vector<4x8xf32>
    %10 = vector.multi_reduction <maximumf>, %8, %cst_13 [2] : vector<4x8x8xf32> to vector<4x8xf32>
    %11 = vector.shape_cast %10 : vector<4x8xf32> to vector<4x8x1xf32>
    %12 = arith.maximumf %9, %11 : vector<4x8x1xf32>
    %13 = arith.subf %9, %12 : vector<4x8x1xf32>
    %14 = math.exp %13 : vector<4x8x1xf32>
    %15 = vector.broadcast %12 : vector<4x8x1xf32> to vector<4x8x8xf32>
    %16 = arith.subf %8, %15 : vector<4x8x8xf32>
    %17 = math.exp %16 : vector<4x8x8xf32>
    %c0_14 = arith.constant 0 : index
    %c0_15 = arith.constant 0 : index
    %c0_16 = arith.constant 0 : index
    %18 = vector.load %arg8[%c0_14, %c0_15, %c0_16] : memref<4x8x1xf32, #tpu.memory_space<vmem>>, vector<4x8x1xf32>
    %19 = arith.mulf %14, %18 : vector<4x8x1xf32>
    %cst_17 = arith.constant dense<0.000000e+00> : vector<4x8xf32>
    %20 = vector.multi_reduction <add>, %17, %cst_17 [2] : vector<4x8x8xf32> to vector<4x8xf32>
    %21 = vector.shape_cast %20 : vector<4x8xf32> to vector<4x8x1xf32>
    %22 = arith.addf %19, %21 : vector<4x8x1xf32>
    %c0_18 = arith.constant 0 : index
    %c0_19 = arith.constant 0 : index
    %c0_20 = arith.constant 0 : index
    %23 = vector.load %arg8[%c0_18, %c0_19, %c0_20] : memref<4x8x1xf32, #tpu.memory_space<vmem>>, vector<4x8x1xf32>
    tpu.vector_store %arg8[%c0_18, %c0_19, %c0_20], %22 {strides = array<i32>} : memref<4x8x1xf32, #tpu.memory_space<vmem>>, vector<4x8x1xf32>,
    %c0_21 = arith.constant 0 : index
    %c0_22 = arith.constant 0 : index
    %c0_23 = arith.constant 0 : index
    %24 = vector.load %arg9[%c0_21, %c0_22, %c0_23] : memref<4x8x32xf32, #tpu.memory_space<vmem>>, vector<4x8x32xf32>
    %25 = vector.broadcast %14 : vector<4x8x1xf32> to vector<4x8x32xf32>
    %26 = arith.mulf %25, %24 : vector<4x8x32xf32>
    "tpu.trace_start"() <{level = 10 : i32, message = "gls,gsd->gld"}> : () -> ()
    %cst_24 = arith.constant dense<0.000000e+00> : vector<4x8x32xf32>
    %27 = tpu.matmul %17, %5, %cst_24 {dimension_numbers = #tpu.dot_dimension_numbers<[2], [1], [1], [2], [0, 0, 0, 1, 1, 2], [0], [0]>} : vector<4x8x8xf32>, vector<4x8x32xf32>, vector<4x8x32xf32> -> vector<4x8x32xf32>
    "tpu.trace_stop"() : () -> ()
    %28 = arith.addf %26, %27 : vector<4x8x32xf32>
    %c0_25 = arith.constant 0 : index
    %c0_26 = arith.constant 0 : index
    %c0_27 = arith.constant 0 : index
    %29 = vector.load %arg9[%c0_25, %c0_26, %c0_27] : memref<4x8x32xf32, #tpu.memory_space<vmem>>, vector<4x8x32xf32>
    tpu.vector_store %arg9[%c0_25, %c0_26, %c0_27], %28 {strides = array<i32>} : memref<4x8x32xf32, #tpu.memory_space<vmem>>, vector<4x8x32xf32>,
    %c0_28 = arith.constant 0 : index
    %c0_29 = arith.constant 0 : index
    %c0_30 = arith.constant 0 : index
    %30 = vector.load %arg7[%c0_28, %c0_29, %c0_30] : memref<4x8x1xf32, #tpu.memory_space<vmem>>, vector<4x8x1xf32>
    tpu.vector_store %arg7[%c0_28, %c0_29, %c0_30], %12 {strides = array<i32>} : memref<4x8x1xf32, #tpu.memory_space<vmem>>, vector<4x8x1xf32>,
    %c0_i32_31 = arith.constant 0 : i32
    %31 = arith.cmpi eq, %arg2, %c0_i32_31 : i32
    %32 = arith.extui %31 : i1 to i32
    %c0_i32_32 = arith.constant 0 : i32
    %33 = arith.cmpi ne, %32, %c0_i32_32 : i32
    scf.if %33 {
      %c0_33 = arith.constant 0 : index
      %c0_34 = arith.constant 0 : index
      %c0_35 = arith.constant 0 : index
      %34 = vector.load %arg8[%c0_33, %c0_34, %c0_35] : memref<4x8x1xf32, #tpu.memory_space<vmem>>, vector<4x8x1xf32>
      %35 = tpu.reciprocal %34 {approx = true} : vector<4x8x1xf32> -> vector<4x8x1xf32>
      %36 = arith.mulf %34, %35 : vector<4x8x1xf32>
      %cst_36 = arith.constant 2.000000e+00 : f32
      %37 = vector.broadcast %cst_36 : f32 to vector<4x8x1xf32>
      %38 = arith.subf %37, %36 : vector<4x8x1xf32>
      %39 = arith.mulf %35, %38 : vector<4x8x1xf32>
      %c0_37 = arith.constant 0 : index
      %c0_38 = arith.constant 0 : index
      %c0_39 = arith.constant 0 : index
      %40 = vector.load %arg9[%c0_37, %c0_38, %c0_39] : memref<4x8x32xf32, #tpu.memory_space<vmem>>, vector<4x8x32xf32>
      %41 = vector.broadcast %39 : vector<4x8x1xf32> to vector<4x8x32xf32>
      %42 = arith.mulf %40, %41 : vector<4x8x32xf32>
      %43 = vector.extract_strided_slice %42 {offsets = [0, 0, 0], sizes = [1, 8, 32], strides = [1, 1, 1]} : vector<4x8x32xf32> to vector<1x8x32xf32>
      %44 = vector.shape_cast %43 : vector<1x8x32xf32> to vector<8x32xf32>
      %45 = vector.extract_strided_slice %42 {offsets = [1, 0, 0], sizes = [1, 8, 32], strides = [1, 1, 1]} : vector<4x8x32xf32> to vector<1x8x32xf32>
      %46 = vector.shape_cast %45 : vector<1x8x32xf32> to vector<8x32xf32>
      %47 = vector.extract_strided_slice %42 {offsets = [2, 0, 0], sizes = [1, 8, 32], strides = [1, 1, 1]} : vector<4x8x32xf32> to vector<1x8x32xf32>
      %48 = vector.shape_cast %47 : vector<1x8x32xf32> to vector<8x32xf32>
      %49 = vector.extract_strided_slice %42 {offsets = [3, 0, 0], sizes = [1, 8, 32], strides = [1, 1, 1]} : vector<4x8x32xf32> to vector<1x8x32xf32>
      %50 = vector.shape_cast %49 : vector<1x8x32xf32> to vector<8x32xf32>
      %51 = tpu.concatenate %44, %46, %48, %50 in 1 : vector<8x32xf32>, vector<8x32xf32>, vector<8x32xf32>, vector<8x32xf32> -> vector<8x128xf32>
      %52 = vector.shape_cast %51 : vector<8x128xf32> to vector<1x8x128xf32>
      %c0_40 = arith.constant 0 : index
      %c0_41 = arith.constant 0 : index
      %c0_42 = arith.constant 0 : index
      %53 = vector.load %arg6[%c0_40, %c0_41, %c0_42] : memref<1x8x128xf32, #tpu.memory_space<vmem>>, vector<1x8x128xf32>
      tpu.vector_store %arg6[%c0_40, %c0_41, %c0_42], %52 {strides = array<i32>} : memref<1x8x128xf32, #tpu.memory_space<vmem>>, vector<1x8x128xf32>,
    } else {
    }
    return
  }
  func.func @transform_0(%arg0: i32, %arg1: i32, %arg2: i32) -> (i32, i32, i32) {
    %c0_i32 = arith.constant 0 : i32
    %c0_i32_0 = arith.constant 0 : i32
    return %arg0, %arg1, %c0_i32 : i32, i32, i32
  }
  func.func @transform_1(%arg0: i32, %arg1: i32, %arg2: i32) -> (i32, i32, i32) {
    %c0_i32 = arith.constant 0 : i32
    %c0_i32_0 = arith.constant 0 : i32
    return %arg0, %c0_i32, %arg2 : i32, i32, i32
  }
  func.func @transform_2(%arg0: i32, %arg1: i32, %arg2: i32) -> (i32, i32, i32) {
    %c0_i32 = arith.constant 0 : i32
    %c0_i32_0 = arith.constant 0 : i32
    return %arg0, %arg2, %c0_i32 : i32, i32, i32
  }
  func.func @transform_3(%arg0: i32, %arg1: i32, %arg2: i32) -> (i32, i32, i32) {
    %c0_i32 = arith.constant 0 : i32
    %c0_i32_0 = arith.constant 0 : i32
    return %arg0, %arg1, %c0_i32 : i32, i32, i32
  }
}

</mosaic_0001>

<bundles_post_ra>
// kernel: tpu_custom_call.1
= control target key start
LH: loop header
LB: loop body
LE: loop exit
PB: predicated region body
PF: predicated region fallthrough
CT: control target
= control target key end

     0   :  { %8 = vsyncpa [#allocation6], 0  ;;  %s1247_s0 = inlined_call_operand.vmem [shape: f32[8,8,32], index: 0, kind: input, shape index: {}]   ;;  %s1248_s1 = inlined_call_operand.vmem [shape: f32[8,32,8], index: 1, kind: input, shape index: {}]   ;;  %s1249_s2 = inlined_call_operand.vmem [shape: f32[8,8,32], index: 2, kind: input, shape index: {}]   ;;  %s1250_s3 = inlined_call_operand.hbm [shape: f32[2,8,128], index: 3, kind: output, shape index: {}]  }
   0x1   :  { %10 = vsyncpa [#allocation6 + $0x1], 0  ;;  %s1050_s12 = smov 0   ;;  %s1052_s13 = smov 0  }
   0x2   :  { %s1054_s14 = smov 0   ;;  %s1056_s15 = smov 0  }
   0x3   :  { %s1058_s16 = smov 0   ;;  %s1060_s17 = smov 0  }
   0x4 LB: > { %s830_s18 = sadd.s32 4294967295, %s1022_s17   ;;  %s831_s19 = sadd.s32 4294967294, %s1022_s17   ;;  %s1022_s17 = sphi %s1060_s17, %s16_s17   ;;  %s1018_s16 = sphi %s1058_s16, %s1257_s16   ;;  %s1014_s15 = sphi %s1056_s15, %s1256_s15   ;;  %s1010_s14 = sphi %s1054_s14, %s1255_s14   ;;  %s1006_s13 = sphi %s1052_s13, %s1254_s13   ;;  %s1002_s12 = sphi %s1050_s12, %s1253_s12  }
   0x5   : > { %s35_s20 = sadd.s32 1, %s1018_s16  ;;  %s128_s21 = sadd.s32 1, %s1010_s14 }
   0x6   : > { %p37_p0 = scmp.ge.s32.totalorder %s35_s20, 2  ;;  %p138_p1 = scmp.ne.s32.totalorder %s1010_s14, %s1006_s13 }
   0x7   : > { %p139_p2 = scmp.eq.s32.totalorder %s830_s18, 1  ;;  %p144_p3 = scmp.ne.s32.totalorder %s1006_s13, %s1002_s12 }
   0x8   : > { %s1259_s20 = smov (%p37_p0, %s35_s20), 0  ;;  %p145_p5 = scmp.eq.s32.totalorder %s831_s19, 1 }
   0x9   : > { %p1090_p4 = por %p139_p2, %p138_p1  ;;  %s123_s23 = ssub.s32 %s1018_s16, %s1259_s20 }
   0xa   : > { %p834_p6 = scmp.ge.s32.totalorder %s1022_s17, 1  ;;  %p126_p7 = scmp.eq.s32.totalorder %s123_s23, 0 }
   0xb   : > { %p1097_p8 = por %p145_p5, %p144_p3  ;;  %p200_p9 = scmp.lt.s32.totalorder %s1022_s17, 3 }
   0xc   : > { %s1103_s25 = scalar_select %p126_p7, %s1010_s14, %s128_s21  }
   0xd   : > { %p201_p10 = pnand %p834_p6, %p200_p9 }
   0xe   : > { %s836_s26 = sshll.u32 (!%p201_p10), %s1014_s15, 2  ;;  %s1027_s11 = smov (!%p201_p10), 64  }
   0xf   : > { %204 = sbr.rel (%p201_p10) target bundleno = 845 (0x34d), region = 32  ;;  %p245_p11 = scmp.lt.s32.totalorder (!%p201_p10), %s836_s26, 7 }
  0x10   : > { %s1028_s18 = smov (!%p201_p10), 32   ;;  %s1029_s19 = smov (!%p201_p10), 96  }
  0x11   : > { %s241_s21 = sand.u32 (!%p201_p10), 1, %s1006_s13  }
  0x12   : > { %s835_s23 = sshll.u32 (!%p201_p10), %s241_s21, 3 }
  0x13   : > { %s243_s30 = scalar_lea.vmem (!%p201_p10), [#allocation5], %s835_s23 }
  0x14   : > { %s1261_s26 = smov (!%p245_p11, %s836_s26), 7  ;;  %vm285_vm0 = vcmask 261120   ;;  %vm276_vm1 = vcmask 7168   ;;  %v1024_v21 = vmov -inf   ;;  %vm415_vm2 = vcmask 64512  }
  0x15   : > { %s855_s27 = sshll.u32 %s1261_s26, 5  ;;  %s837_s28 = sshll.u32 %s1261_s26, 3  ;;  %278 = vst.msk [vmem:[#allocation2 + $0x8] sm:$0xff] %vm276_vm1, %v1024_v21  ;;  %v1025_v31 = vmov 0   ;;  %v1026_v32 = vmov 0.0   ;;  %vm701_vm3 = vcmask 523264  }
  0x16   : > { %s1113_s4 = scalar_lea.vmem %s1248_s1, %s855_s27  ;;  %s1120_s7 = scalar_lea.vmem %s1247_s0, %s837_s28  ;;  %277 = vst.msk [vmem:[#allocation2] sm:$0xff] %vm276_vm1, %v1024_v21  ;;  %919 = vset.pattern.permute.xlu0 %v1025_v31  ;;  %917 = vset.pattern.permute.xlu1 %v1025_v31  ;;  %vm703_vm4 = vcmask 785408  }
  0x17   : > { %v301_v0 = vld [vmem:[%s1113_s4 + $0x38] sm:$0xff]  ;;  %v300_v2 = vld [vmem:[%s1113_s4 + $0x30] sm:$0xff]  ;;  %v299_v4 = vld [vmem:[%s1113_s4 + $0x28] sm:$0xff]  ;;  %279 = vst.msk [vmem:[#allocation2 + $0x10] sm:$0xff] %vm276_vm1, %v1024_v21  ;;  %918 = vset.pattern.permute.xlu2 %v1025_v31  ;;  %s1182_s10 = scalar_lea.vmem %s1249_s2, %s837_s28  ;;  %s852_s26 = sshll.u32 %s1014_s15, 3 }
  0x18   : > { %v305_v1 = vld [vmem:[%s1113_s4 + $0x58] sm:$0xff]  ;;  %357 = vmatpush.msra.mxu1 %v301_v0  ;;  %v304_v3 = vld [vmem:[%s1113_s4 + $0x50] sm:$0xff]  ;;  %v303_v5 = vld [vmem:[%s1113_s4 + $0x48] sm:$0xff]  ;;  %280 = vst.msk [vmem:[#allocation2 + $0x18] sm:$0xff] %vm276_vm1, %v1024_v21  ;;  %s718_s29 = scalar_lea.hbm %s1250_s3, %s852_s26  ;;  %s707_s15 = scalar_lea.sflag [#allocation6], %s241_s21 }
  0x19   : > { %380 = vmatpush.msra.mxu2 %v305_v1  ;;  %v291_v6 = vld [vmem:[%s1120_s7 + $0x8] sm:$0xff]  ;;  %v292_v7 = vld [vmem:[%s1120_s7 + $0x10] sm:$0xff]  ;;  %v309_v8 = vld [vmem:[%s1113_s4 + $0x78] sm:$0xff]  ;;  %284 = vst.msk [vmem:[#allocation3 + $0x18] sm:$0xff] %vm276_vm1, %v1026_v32  ;;  %s722_s5 = sshll.u32 %s718_s29, 4  ;;  %s723_s5 = int_to_ptr.hbm [resolvable:$true] %s722_s5 }
  0x1a   : > { %358 = vmatpush.msra.mxu1 %v300_v2  ;;  %v308_v9 = vld [vmem:[%s1113_s4 + $0x70] sm:$0xff]  ;;  %v298_v10 = vld [vmem:[%s1113_s4 + $0x20] sm:$0xff]  ;;  %v315_v12 = vmul.f32 0.17677669, %v291_v6  ;;  %v316_v13 = vmul.f32 0.17677669, %v292_v7  ;;  %403 = vmatpush.msra.mxu3 %v309_v8 }
  0x1b   : > { %381 = vmatpush.msra.mxu2 %v304_v3  ;;  %v302_v11 = vld [vmem:[%s1113_s4 + $0x40] sm:$0xff]  ;;  %v293_v14 = vld [vmem:[%s1120_s7 + $0x18] sm:$0xff]  ;;  %v307_v15 = vld [vmem:[%s1113_s4 + $0x68] sm:$0xff]  ;;  %281 = vst.msk [vmem:[#allocation3] sm:$0xff] %vm276_vm1, %v1026_v32  ;;  %s958_s6 = sshra.s32 %s723_s5, 4  ;;  %s959_s6 = int_to_ptr.hbm [resolvable:$true] %s958_s6 }
  0x1c   : > { %359 = vmatpush.msra.mxu1 %v299_v4  ;;  %404 = vmatpush.msra.mxu3 %v308_v9  ;;  %v306_v16 = vld [vmem:[%s1113_s4 + $0x60] sm:$0xff]  ;;  %v317_v17 = vmul.f32 0.17677669, %v293_v14  ;;  %v297_v18 = vld [vmem:[%s1113_s4 + $0x18] sm:$0xff]  ;;  %v296_v19 = vld [vmem:[%s1113_s4 + $0x10] sm:$0xff]  ;;  %282 = vst.msk [vmem:[#allocation3 + $0x8] sm:$0xff] %vm276_vm1, %v1026_v32  ;;  %p965_p1 = scmp.lt.s32.totalorder %s959_s6, %s1250_s3 }
  0x1d   : > { %382 = vmatpush.msra.mxu2 %v303_v5  ;;  %334 = vmatpush.msra.mxu0 %v297_v18  ;;  %v290_v20 = vld [vmem:[%s1120_s7] sm:$0xff]  ;;  %v295_v22 = vld [vmem:[%s1113_s4 + $0x8] sm:$0xff]  ;;  %283 = vst.msk [vmem:[#allocation3 + $0x10] sm:$0xff] %vm276_vm1, %v1026_v32  ;;  %v313_v47 = vld [vmem:[%s1182_s10 + $0x18] sm:$0xff]  ;;  %s960_s7 = scalar_lea.hbm %s959_s6, 8 }
  0x1e   : > { %360 = vmatpush.msra.mxu1 %v298_v10  ;;  %405 = vmatpush.msra.mxu3 %v307_v15  ;;  %v294_v23 = vld [vmem:[%s1113_s4] sm:$0xff]  ;;  %v314_v24 = vmul.f32 0.17677669, %v290_v20  ;;  %286 = vst.msk [vmem:[#allocation4] sm:$0xff] %vm285_vm0, %v1026_v32  ;;  %v1161_v33 = vld [vmem:[#allocation2 + $0x8] sm:$0xff]  ;;  %v413_v37 = vld [vmem:[#allocation2 + $0x10] sm:$0xff]  ;;  %p961_p12 = scmp.ne.s32.totalorder %s959_s6, %s960_s7 }
  0x1f   : > { %383 = vmatpush.msra.mxu2 %v302_v11  ;;  %844 = vmatmul.msk.f32.vlgmr.msra.gmra.mxu1 %vm285_vm0, %v315_v12  ;;  %287 = vst.msk [vmem:[#allocation4 + $0x8] sm:$0xff] %vm285_vm0, %v1026_v32  ;;  %v414_v41 = vld [vmem:[#allocation2 + $0x18] sm:$0xff]  ;;  %v311_v48 = vld [vmem:[%s1182_s10 + $0x8] sm:$0xff]  ;;  %v312_v49 = vld [vmem:[%s1182_s10 + $0x10] sm:$0xff]  ;;  %s720_s4 = sshll.u32 %s243_s30, 4  ;;  %s721_s4 = int_to_ptr.vmem [resolvable:$true] %s720_s4 }
  0x20   : > { %845 = vmatmul.msk.f32.vlgmr.msra.gmra.mxu2 %vm285_vm0, %v316_v13  ;;  %406 = vmatpush.msra.mxu3 %v306_v16  ;;  %288 = vst.msk [vmem:[#allocation4 + $0x10] sm:$0xff] %vm285_vm0, %v1026_v32  ;;  %v411_v0 = vld [vmem:[#allocation2] sm:$0xff]  ;;  %v479_v7 = vld [vmem:[#allocation3 + $0x18] sm:$0xff]  ;;  %p962_p13 = pnand %p961_p12, %p1090_p4 }
  0x21   : > { %846 = vmatmul.msk.f32.vlgmr.msra.gmra.mxu3 %vm285_vm0, %v317_v17  ;;  %335 = vmatpush.msra.mxu0 %v296_v19  ;;  %289 = vst.msk [vmem:[#allocation4 + $0x18] sm:$0xff] %vm285_vm0, %v1026_v32  ;;  %v310_v20 = vld [vmem:[%s1182_s10] sm:$0xff]  ;;  %s964_s10 = scalar_lea.hbm %s1250_s3, 16 }
  0x22   : > { %620 = vmatpush.msrb.mxu3 %v313_v47  ;;  %574 = vmatpush.msrb.mxu1 %v311_v48  ;;  %p963_p0 = pneg %p962_p13  ;;  %p966_p2 = scmp.lt.s32.totalorder %s964_s10, %s960_s7 }
  0x23   : > { %336 = vmatpush.msra.mxu0 %v295_v22  ;;  %597 = vmatpush.msrb.mxu2 %v312_v49  ;;  %v477_v32 = vld [vmem:[#allocation3 + $0x8] sm:$0xff] }
  0x24   : > { %v478_v14 = vld [vmem:[#allocation3 + $0x10] sm:$0xff]  ;;  %p967_p3 = por %p966_p2, %p965_p1 }
  0x25   : > { %337 = vmatpush.msra.mxu0 %v294_v23 }
  0x26   : > { %843 = vmatmul.msk.f32.vlgmr.msra.gmra.mxu0 %vm285_vm0, %v314_v24  ;;  %p968_p5 = pnand %p967_p3, %p963_p0 }
  0x27   : > { %551 = vmatpush.msrb.mxu0 %v310_v20 }
  0x9c   : > { %v362_v25 = vpop.f32.mrf.mxu1 }
  0x9d   : > { %v419_v26 = vsel %vm415_vm2, %v362_v25, -inf }
  0x9e   : > { %420 = vmax.xlane.f32.xlu1 %v419_v26 }
  0xa3   : > { %v385_v27 = vpop.f32.mrf.mxu2  ;;  %v1173_v45 = vpop.f32.mrf.mxu0 }
  0xa4   : > { %v422_v28 = vsel %vm415_vm2, %v385_v27, -inf  ;;  %v408_v29 = vpop.f32.mrf.mxu3  ;;  %v416_v46 = vsel %vm415_vm2, %v1173_v45, -inf }
  0xa5   : > { %423 = vmax.xlane.f32.xlu0 %v422_v28  ;;  %v425_v30 = vsel %vm415_vm2, %v408_v29, -inf }
  0xad   : > { %426 = vmax.xlane.f32.xlu0 %v425_v30 }
 0x111   : > { %v421_v34 = vpop.xlane.xlu1 %420 }
 0x112   : > { %v1164_v35 = vmax.f32 %v1161_v33, %v421_v34 }
 0x114   : > { %v433_v36 = vsub.f32 %v1161_v33, %v1164_v35  ;;  %634 = vst.msk [vmem:[#allocation2 + $0x8] sm:$0xff] %vm276_vm1, %v1164_v35  ;;  %451 = vperm.xlu0 %919, %v1164_v35   ;;  %v507_v35 = vld [vmem:[#allocation4 + $0x10] sm:$0xff] }
 0x116   : > { %v438_v30 = vmul.f32 1.442695, %v433_v36 }
 0x118   : > { %v424_v38 = vpop.xlane.xlu0 %423 }
 0x119   : > { %v430_v39 = vmax.f32 %v413_v37, %v424_v38 }
 0x11b   : > { %v434_v40 = vsub.f32 %v413_v37, %v430_v39  ;;  %635 = vst.msk [vmem:[#allocation2 + $0x10] sm:$0xff] %vm276_vm1, %v430_v39  ;;  %456 = vperm.xlu1 %917, %v430_v39  }
 0x11d   : > { %v440_v8 = vmul.f32 1.442695, %v434_v40 }
 0x120   : > { %v427_v42 = vpop.xlane.xlu0 %426 }
 0x121   : > { %v431_v43 = vmax.f32 %v414_v41, %v427_v42 }
 0x123   : > { %v435_v44 = vsub.f32 %v414_v41, %v431_v43  ;;  %636 = vst.msk [vmem:[#allocation2 + $0x18] sm:$0xff] %vm276_vm1, %v431_v43  ;;  %461 = vperm.xlu2 %918, %v431_v43  }
 0x125   : > { %v442_v5 = vmul.f32 1.442695, %v435_v44 }
 0x14c   : > { %417 = vmax.xlane.f32.xlu2 %v416_v46 }
 0x17d   : > { %v462_v50 = vpop.permute.xlu2 %461 }
 0x17e   : > { %v467_v51 = vsub.f32 %v408_v29, %v462_v50 }
 0x180   : > { %v474_v52 = vmul.f32 1.442695, %v467_v51 }
 0x182   : > { %920 = vpow2.f32 %v474_v52 }
 0x186   : > { %v452_v53 = vpop.permute.xlu0 %451 }
 0x187   : > { %v465_v55 = vsub.f32 %v362_v25, %v452_v53 }
 0x188   : > { %v921_v54 = vpop.eup %920 }
 0x189   : > { %850 = vmatmul.msk.f32.vlgmr.msrb.gmra.mxu3 %vm415_vm2, %v921_v54  ;;  %v493_v56 = vsel %vm415_vm2, %v921_v54, 0.0  ;;  %v470_v57 = vmul.f32 1.442695, %v465_v55  ;;  %v476_v54 = vld [vmem:[#allocation3] sm:$0xff] }
 0x18a   : > { %494 = vadd.xlane.f32.xlu0 %v493_v56 }
 0x18b   : > { %922 = vpow2.f32 %v470_v57 }
 0x18d   : > { %v457_v58 = vpop.permute.xlu1 %456 }
 0x18e   : > { %v466_v59 = vsub.f32 %v385_v27, %v457_v58  ;;  %v505_v58 = vld [vmem:[#allocation4] sm:$0xff] }
 0x190   : > { %v472_v60 = vmul.f32 1.442695, %v466_v59 }
 0x191   : > { %v923_v61 = vpop.eup %922 }
 0x192   : > { %924 = vpow2.f32 %v472_v60  ;;  %848 = vmatmul.msk.f32.vlgmr.msrb.gmra.mxu1 %vm415_vm2, %v923_v61  ;;  %v487_v4 = vsel %vm415_vm2, %v923_v61, 0.0  ;;  %v506_v60 = vld [vmem:[#allocation4 + $0x8] sm:$0xff] }
 0x193   : > { %926 = vpow2.f32 %v442_v5  ;;  %v508_v5 = vld [vmem:[#allocation4 + $0x18] sm:$0xff] }
 0x194   : > { %928 = vpow2.f32 %v440_v8 }
 0x198   : > { %v925_v62 = vpop.eup %924 }
 0x199   : > { %849 = vmatmul.msk.f32.vlgmr.msrb.gmra.mxu2 %vm415_vm2, %v925_v62  ;;  %v490_v63 = vsel %vm415_vm2, %v925_v62, 0.0  ;;  %v927_v6 = vpop.eup %926 }
 0x19a   : > { %491 = vadd.xlane.f32.xlu2 %v490_v63  ;;  %v483_v9 = vmul.f32 %v927_v6, %v479_v7  ;;  %v929_v13 = vpop.eup %928 }
 0x19b   : > { %v482_v16 = vmul.f32 %v929_v13, %v478_v14 }
 0x1bf   : > { %v418_v1 = vpop.xlane.xlu2 %417 }
 0x1c0   : > { %v428_v2 = vmax.f32 %v411_v0, %v418_v1 }
 0x1c2   : > { %v432_v3 = vsub.f32 %v411_v0, %v428_v2  ;;  %633 = vst.msk [vmem:[#allocation2] sm:$0xff] %vm276_vm1, %v428_v2  ;;  %446 = vperm.xlu1 %917, %v428_v2  }
 0x1c4   : > { %v436_v12 = vmul.f32 1.442695, %v432_v3 }
 0x1c6   : > { %930 = vpow2.f32 %v436_v12 }
 0x1cc   : > { %v931_v15 = vpop.eup %930 }
 0x1cd   : > { %v480_v55 = vmul.f32 %v931_v15, %v476_v54 }
 0x1ec   : > { %488 = vadd.xlane.f32.xlu1 %v487_v4 }
 0x1fd   : > { %v495_v10 = vpop.xlane.xlu0 %494 }
 0x1fe   : > { %v499_v11 = vadd.f32 %v495_v10, %v483_v9 }
 0x200   : > { %504 = vst.msk [vmem:[#allocation3 + $0x18] sm:$0xff] %vm276_vm1, %v499_v11 }
 0x205   : > { %521 = vperm.xlu1 %917, %v929_v13  }
 0x207   : > { %v643_v40 = vld [vmem:[#allocation3 + $0x18] sm:$0xff] }
 0x20c   : > { %v622_v9 = vpop.f32.mrf.mxu3 }
 0x20d   : > { %511 = vperm.xlu1 %917, %v931_v15   ;;  %v492_v17 = vpop.xlane.xlu2 %491 }
 0x20e   : > { %v498_v18 = vadd.f32 %v492_v17, %v482_v16 }
 0x20f   : > { %v576_v1 = vpop.f32.mrf.mxu1 }
 0x210   : > { %503 = vst.msk [vmem:[#allocation3 + $0x10] sm:$0xff] %vm276_vm1, %v498_v18 }
 0x217   : > { %v642_v19 = vld [vmem:[#allocation3 + $0x10] sm:$0xff] }
 0x218   : > { %932 = vrcp.f32 %v642_v19 }
 0x21c   : > { %v599_v47 = vpop.f32.mrf.mxu2 }
 0x21e   : > { %v933_v21 = vpop.eup %932 }
 0x21f   : > { %v650_v22 = vmul.f32 %v933_v21, %v642_v19 }
 0x221   : > { %v654_v23 = vsub.f32 2.0, %v650_v22 }
 0x223   : > { %v658_v24 = vmul.f32 %v933_v21, %v654_v23 }
 0x225   : > { %676 = vperm.xlu0 %919, %v658_v24  }
 0x234   : > { %v447_v25 = vpop.permute.xlu1 %446 }
 0x235   : > { %v464_v26 = vsub.f32 %v1173_v45, %v447_v25 }
 0x237   : > { %v468_v27 = vmul.f32 1.442695, %v464_v26 }
 0x239   : > { %934 = vpow2.f32 %v468_v27 }
 0x23a   : > { %936 = vpow2.f32 %v438_v30 }
 0x23f   : > { %v935_v28 = vpop.eup %934 }
 0x240   : > { %847 = vmatmul.msk.f32.vlgmr.msrb.gmra.mxu0 %vm415_vm2, %v935_v28  ;;  %v484_v29 = vsel %vm415_vm2, %v935_v28, 0.0  ;;  %v937_v31 = vpop.eup %936 }
 0x241   : > { %485 = vadd.xlane.f32.xlu2 %v484_v29  ;;  %v481_v34 = vmul.f32 %v937_v31, %v477_v32 }
 0x259   : > { %516 = vperm.xlu2 %918, %v937_v31  }
 0x25f   : > { %v489_v37 = vpop.xlane.xlu1 %488 }
 0x260   : > { %v497_v38 = vadd.f32 %v489_v37, %v481_v34 }
 0x261   : > { %526 = vperm.xlu2 %918, %v927_v6  }
 0x262   : > { %502 = vst.msk [vmem:[#allocation3 + $0x8] sm:$0xff] %vm276_vm1, %v497_v38 }
 0x269   : > { %v641_v39 = vld [vmem:[#allocation3 + $0x8] sm:$0xff] }
 0x26a   : > { %938 = vrcp.f32 %v641_v39 }
 0x26b   : > { %940 = vrcp.f32 %v643_v40 }
 0x270   : > { %v939_v41 = vpop.eup %938 }
 0x271   : > { %v649_v42 = vmul.f32 %v939_v41, %v641_v39  ;;  %v941_v43 = vpop.eup %940 }
 0x272   : > { %v651_v36 = vmul.f32 %v941_v43, %v643_v40 }
 0x273   : > { %v653_v44 = vsub.f32 2.0, %v649_v42 }
 0x274   : > { %v655_v48 = vsub.f32 2.0, %v651_v36 }
 0x275   : > { %v657_v33 = vmul.f32 %v939_v41, %v653_v44 }
 0x276   : > { %v659_v50 = vmul.f32 %v941_v43, %v655_v48 }
 0x277   : > { %671 = vperm.xlu2 %918, %v657_v33   ;;  %v522_v45 = vpop.permute.xlu1 %521 }
 0x278   : > { %v531_v46 = vmul.f32 %v522_v45, %v507_v35 }
 0x27a   : > { %v627_v49 = vadd.f32 %v599_v47, %v531_v46 }
 0x27c   : > { %631 = vst.msk [vmem:[#allocation4 + $0x10] sm:$0xff] %vm285_vm0, %v627_v49 }
 0x27f   : > { %681 = vperm.xlu2 %918, %v659_v50   ;;  %v512_v59 = vpop.permute.xlu1 %511 }
 0x280   : > { %v529_v61 = vmul.f32 %v512_v59, %v505_v58 }
 0x283   : > { %v662_v51 = vld [vmem:[#allocation4 + $0x10] sm:$0xff] }
 0x297   : > { %v677_v52 = vpop.permute.xlu0 %676 }
 0x298   : > { %v686_v53 = vmul.f32 %v677_v52, %v662_v51 }
 0x29a   : > { %693 = vrot.lane.b32.xlu0 %v686_v53, %s1027_s11 }
 0x2b4   : > { %v486_v56 = vpop.xlane.xlu2 %485 }
 0x2b5   : > { %v496_v57 = vadd.f32 %v486_v56, %v480_v55 }
 0x2b7   : > { %501 = vst.msk [vmem:[#allocation3] sm:$0xff] %vm276_vm1, %v496_v57 }
 0x2bc   : > { %v517_v62 = vpop.permute.xlu2 %516 }
 0x2bd   : > { %v530_v63 = vmul.f32 %v517_v62, %v506_v60  ;;  %v553_v0 = vpop.f32.mrf.mxu0 }
 0x2be   : > { %v625_v2 = vadd.f32 %v553_v0, %v529_v61  ;;  %v640_v3 = vld [vmem:[#allocation3] sm:$0xff] }
 0x2bf   : > { %v626_v4 = vadd.f32 %v576_v1, %v530_v63  ;;  %942 = vrcp.f32 %v640_v3 }
 0x2c0   : > { %629 = vst.msk [vmem:[#allocation4] sm:$0xff] %vm285_vm0, %v625_v2 }
 0x2c1   : > { %630 = vst.msk [vmem:[#allocation4 + $0x8] sm:$0xff] %vm285_vm0, %v626_v4 }
 0x2c4   : > { %v527_v6 = vpop.permute.xlu2 %526 }
 0x2c5   : > { %v943_v7 = vpop.eup %942  ;;  %v532_v8 = vmul.f32 %v527_v6, %v508_v5 }
 0x2c6   : > { %v648_v10 = vmul.f32 %v943_v7, %v640_v3 }
 0x2c7   : > { %v628_v11 = vadd.f32 %v622_v9, %v532_v8  ;;  %v660_v21 = vld [vmem:[#allocation4] sm:$0xff] }
 0x2c8   : > { %v652_v12 = vsub.f32 2.0, %v648_v10  ;;  %v661_v14 = vld [vmem:[#allocation4 + $0x8] sm:$0xff] }
 0x2c9   : > { %632 = vst.msk [vmem:[#allocation4 + $0x18] sm:$0xff] %vm285_vm0, %v628_v11 }
 0x2ca   : > { %v656_v13 = vmul.f32 %v943_v7, %v652_v12 }
 0x2cc   : > { %666 = vperm.xlu2 %918, %v656_v13  }
 0x2d0   : > { %v663_v17 = vld [vmem:[#allocation4 + $0x18] sm:$0xff] }
 0x2d1   : > { %v672_v15 = vpop.permute.xlu2 %671 }
 0x2d2   : > { %v685_v16 = vmul.f32 %v672_v15, %v661_v14 }
 0x2d4   : > { %689 = vrot.lane.b32.xlu1 %v685_v16, %s1028_s18 }
 0x2d9   : > { %v682_v18 = vpop.permute.xlu2 %681 }
 0x2da   : > { %v687_v19 = vmul.f32 %v682_v18, %v663_v17 }
 0x2dc   : > { %697 = vrot.lane.b32.xlu2 %v687_v19, %s1029_s19 }
 0x30c   : > { %v694_v24 = vpop.permute.xlu0 %693 }
 0x326   : > { %v667_v20 = vpop.permute.xlu2 %666 }
 0x327   : > { %v684_v22 = vmul.f32 %v667_v20, %v660_v21 }
 0x336   : > { %v698_v26 = vpop.permute.xlu2 %697 }
 0x346   : > { %v690_v23 = vpop.permute.xlu1 %689 }
 0x347   : > { %v700_v25 = vsel %vm285_vm0, %v684_v22, %v690_v23 }
 0x348   : > { %v702_v27 = vsel %vm701_vm3, %v700_v25, %v694_v24 }
 0x349   : > { %v704_v28 = vsel %vm703_vm4, %v702_v27, %v698_v26 }
 0x34a   : > { %705 = vst [vmem:[%s243_s30] sm:$0xff] %v704_v28 }
 0x34b   : > { %971 = shalt.err (!%p968_p5)
}
 0x34c   : > { %856 = dma.vmem_to_hbm [thread:$0]  (%p1090_p4), %s721_s4, 128, %s723_s5, %s707_s15  }
 0x34d PF: > { %p862_p6 = scmp.ge.s32.totalorder %s1022_s17, 2  ;;  %s734_s19 = sand.u32 1, %s1002_s12  }
 0x34e   : > { %s735_s21 = scalar_lea.sflag [#allocation6], %s734_s19 }
 0x34f   : > { %p859_p7 = pnand %p862_p6, %p1097_p8 }
 0x351   : > { %p860_p9 = pneg %p859_p7 }
 0x353   : > { %997 = dma.done.wait (%p860_p9), %s735_s21, 128  }
 0x354   : > { %999 = vsyncadd (%p860_p9), %s735_s21, 4294967168  ;;  %s16_s17 = sadd.s32 1, %s1022_s17   ;;  %s1253_s12 = smov %s1006_s13 }
 0x355   : > { %p13_p10 = scmp.ge.s32.totalorder %s16_s17, 4   ;;  %s1254_s13 = smov %s1010_s14 }
 0x356   : > { %s1255_s14 = smov %s1103_s25  ;;  %s1256_s15 = smov %s1018_s16 }
 0x357   : > { %s1257_s16 = smov %s1259_s20  ;;  %15 = sbr.rel (!%p13_p10) target bundleno = 4 (0x4), region = 81 }
 0x35c   :  { %741 = vsyncpa [#allocation6], 1 }
 0x35d   :  { %743 = vsyncpa [#allocation6 + $0x1], 1 }

</bundles_post_ra>
